<compile_context>
chip_gen: v5e
topology: v5e:2x2
jax: 0.10.0
libtpu: 0.0.40
codegen_flags: <defaults>
</compile_context>

<pallas_src>
import jax
import jax.numpy as jnp
from jax.experimental import pallas as pl
from jax.experimental.pallas import tpu as pltpu

LATENT_DIM = 16
D_IN, D1, D2, D3 = 297, 200, 120, 40

# Lane/MXU-aligned padded feature dims (weights only; x is padded in-kernel).
D_IN_P, D1_P, D2_P, D3_P, L_P = 384, 256, 128, 128, 128


def _round_up(n, m):
    return ((n + m - 1) // m) * m


def _choose_tile(batch, *, min_tile=256, max_tile=1024):
    """Batch tile: multiple of 16, minimal batch padding, and >= 2 grid steps
    whenever possible so dimension_semantics=('parallel',) can shard the grid
    across both v7x TensorCores."""
    b16 = _round_up(batch, 16)
    if b16 <= min_tile:
        return b16
    if b16 <= 2 * min_tile:
        return _round_up((b16 + 1) // 2, 16)
    best_tb, best_key = None, None
    for tb in range(min_tile, max_tile + 1, 16):
        b_pad = _round_up(b16, tb)
        steps = b_pad // tb
        if steps < 2:
            continue
        key = (b_pad - b16, steps)  # least padding, then fewest grid steps
        if best_key is None or key < best_key:
            best_tb, best_key = tb, key
    return best_tb


def _mlp_kernel(x_ref, w1_ref, b1_ref, w2_ref, b2_ref, w3_ref, b3_ref,
                w4_ref, o_ref, xpad_ref):
    # In-kernel pad + cast: f32 (tb, 297) -> bf16 (tb, 384) VMEM scratch.
    # The scratch is re-zeroed every step (cheap VPU fill) because on v7x the
    # 'parallel' grid axis is split across TensorCores, so a program_id==0-only
    # init would leave the second core's scratch tail uninitialized.
    xpad_ref[...] = jnp.zeros_like(xpad_ref)
    xpad_ref[:, :D_IN] = x_ref[...].astype(xpad_ref.dtype)

    # Hoist bias reads (single-shot f32 loads).
    b1 = b1_ref[...]
    b2 = b2_ref[...]
    b3 = b3_ref[...]

    # Layer 1: (tb, 384) @ (384, 256) -> f32 acc; bias + ReLU in f32; -> bf16.
    h = jnp.dot(xpad_ref[...], w1_ref[...], preferred_element_type=jnp.float32)
    h = jnp.maximum(h + b1, 0.0).astype(w2_ref.dtype)
    # Layer 2: (tb, 256) @ (256, 128)
    h = jnp.dot(h, w2_ref[...], preferred_element_type=jnp.float32)
    h = jnp.maximum(h + b2, 0.0).astype(w3_ref.dtype)
    # Layer 3: (tb, 128) @ (128, 128)
    h = jnp.dot(h, w3_ref[...], preferred_element_type=jnp.float32)
    h = jnp.maximum(h + b3, 0.0).astype(w4_ref.dtype)
    # Output layer: (tb, 128) @ (128, 128), no bias, no activation.
    z = jnp.dot(h, w4_ref[...], preferred_element_type=jnp.float32)
    o_ref[...] = z.astype(o_ref.dtype)


def encoder_forward_padded(x, padded_params, *, max_tile=1024,
                           compute_dtype=jnp.bfloat16):
    """Fused MLP forward. Returns the padded (B_pad, 128) bf16 latent slab.

    x: (B, 297) float32, unpadded.
    padded_params: output of prep_params().
    """
    B = x.shape[0]
    tb = _choose_tile(B, max_tile=max_tile)
    B_pad = _round_up(B, tb)
    if B_pad != B:
        # At most tb-1 rows of zero-pad on the slow axis; no feature pad/cast.
        x = jnp.pad(x, ((0, B_pad - B), (0, 0)))

    p = padded_params
    grid = (B_pad // tb,)

    def resident(shape):
        # Full-array block, constant index -> DMA'd once, stays VMEM-resident.
        return pl.BlockSpec(shape, lambda i: (0, 0))

    out_itemsize = jnp.dtype(compute_dtype).itemsize
    w_bytes = sum(int(v.size) * v.dtype.itemsize for v in p.values())
    vmem_limit = int(
        2 * tb * D_IN_P * 4                      # x tile (f32, lane-padded), 2-buf
        + tb * D_IN_P * out_itemsize             # padded-x bf16 scratch
        + 2 * tb * L_P * out_itemsize            # output tile (bf16), 2-buf
        + 2 * w_bytes                            # resident weights / biases
        + tb * (D1_P + D2_P + D3_P + L_P) * 4    # f32 intermediates
        + (4 << 20)                              # Mosaic internal-scratch headroom
    )

    flops = 2 * B_pad * (D_IN_P * D1_P + D1_P * D2_P + D2_P * D3_P + D3_P * L_P)
    bytes_accessed = B_pad * (D_IN * 4 + L_P * out_itemsize) + w_bytes

    return pl.pallas_call(
        _mlp_kernel,
        out_shape=jax.ShapeDtypeStruct((B_pad, L_P), compute_dtype),
        grid=grid,
        in_specs=[
            pl.BlockSpec((tb, D_IN), lambda i: (i, 0)),     # x: batch-tiled, unpadded
            resident((D_IN_P, D1_P)), resident((1, D1_P)),  # w1, b1
            resident((D1_P, D2_P)), resident((1, D2_P)),    # w2, b2
            resident((D2_P, D3_P)), resident((1, D3_P)),    # w3, b3
            resident((D3_P, L_P)),                          # w4
        ],
        out_specs=pl.BlockSpec((tb, L_P), lambda i: (i, 0)),
        scratch_shapes=[pltpu.VMEM((tb, D_IN_P), compute_dtype)],
        compiler_params=pltpu.CompilerParams(
            dimension_semantics=("parallel",),
            vmem_limit_bytes=vmem_limit,
        ),
        cost_estimate=pl.CostEstimate(
            flops=flops, transcendentals=0, bytes_accessed=bytes_accessed),
    )(x, p["w1"], p["b1"], p["w2"], p["b2"], p["w3"], p["b3"], p["w4"])


def simple_linear_relu_encoder(x, padded_params, latent_dim, *,
                               return_padded=False, max_tile=1024):
    out = encoder_forward_padded(x, padded_params, max_tile=max_tile)
    if return_padded:
        # Consumers that accept the padded bf16 (B_pad, 128) slab avoid the
        # extra HBM pass for slicing / upcasting.
        return out
    return out[:x.shape[0], :latent_dim].astype(jnp.float32)


def init_params(key, latent_dim):
    """Torch-Linear-style init, stored pre-transposed as (in, out), unpadded f32."""
    def lin(key, fan_in, fan_out, bias=True):
        kw, kb = jax.random.split(key)
        bound = 1.0 / jnp.sqrt(fan_in)
        w = jax.random.uniform(kw, (fan_in, fan_out), jnp.float32, -bound, bound)
        if bias:
            b = jax.random.uniform(kb, (1, fan_out), jnp.float32, -bound, bound)
            return w, b
        return w, None

    k1, k2, k3, k4 = jax.random.split(key, 4)
    w1, b1 = lin(k1, D_IN, D1)
    w2, b2 = lin(k2, D1, D2)
    w3, b3 = lin(k3, D2, D3)
    w4, _ = lin(k4, D3, latent_dim, bias=False)
    return {"w1": w1, "b1": b1, "w2": w2, "b2": b2,
            "w3": w3, "b3": b3, "w4": w4}


def prep_params(params, compute_dtype=jnp.bfloat16):
    """One-time weight prep: zero-pad to aligned shapes; weights bf16, biases f32."""
    def pad2(a, r, c, dtype):
        out = jnp.zeros((r, c), dtype=dtype)
        return out.at[:a.shape[0], :a.shape[1]].set(a.astype(dtype))

    return {
        "w1": pad2(params["w1"], D_IN_P, D1_P, compute_dtype),
        "b1": pad2(params["b1"], 1, D1_P, jnp.float32),
        "w2": pad2(params["w2"], D1_P, D2_P, compute_dtype),
        "b2": pad2(params["b2"], 1, D2_P, jnp.float32),
        "w3": pad2(params["w3"], D2_P, D3_P, compute_dtype),
        "b3": pad2(params["b3"], 1, D3_P, jnp.float32),
        "w4": pad2(params["w4"], D3_P, L_P, compute_dtype),
    }


def reference_forward(x, p):
    """f32 reference on bf16-rounded matmul inputs (matches kernel numerics,
    except the kernel's final bf16 output rounding)."""
    q = lambda a: a.astype(jnp.bfloat16).astype(jnp.float32)
    h = jnp.maximum(q(x) @ q(p["w1"]) + p["b1"], 0.0)
    h = jnp.maximum(q(h) @ q(p["w2"]) + p["b2"], 0.0)
    h = jnp.maximum(q(h) @ q(p["w3"]) + p["b3"], 0.0)
    return q(h) @ q(p["w4"])


if __name__ == "__main__":
    key = jax.random.PRNGKey(0)
    kx, kp = jax.random.split(key)

    params = init_params(kp, LATENT_DIM)
    padded_params = prep_params(params)

    # batch=8 -> single-step grid; batch=200 -> 2-step grid with batch padding.
    for batch in (8, 200):
        x = jax.random.normal(jax.random.fold_in(kx, batch), (batch, D_IN),
                              dtype=jnp.float32)
        z = simple_linear_relu_encoder(x, padded_params, LATENT_DIM)
        jax.block_until_ready(z)

        z_ref = reference_forward(x, params)
        assert z.shape == (batch, LATENT_DIM)
        # Tolerance accounts for bf16 output rounding on top of bf16 matmuls.
        err = float(jnp.max(jnp.abs(z - z_ref)))
        assert jnp.allclose(z, z_ref, atol=2e-2, rtol=2e-2), err

    print("KERNEL_OK")
</pallas_src>

<mosaic_0001>
module attributes {stable_mosaic.version = 11 : i64} {
  func.func @_mlp_kernel(%arg0: i32, %arg1: memref<16x297xf32, #tpu.memory_space<vmem>>, %arg2: memref<384x256xbf16, #tpu.memory_space<vmem>>, %arg3: memref<1x256xf32, #tpu.memory_space<vmem>>, %arg4: memref<256x128xbf16, #tpu.memory_space<vmem>>, %arg5: memref<1x128xf32, #tpu.memory_space<vmem>>, %arg6: memref<128x128xbf16, #tpu.memory_space<vmem>>, %arg7: memref<1x128xf32, #tpu.memory_space<vmem>>, %arg8: memref<128x128xbf16, #tpu.memory_space<vmem>>, %arg9: memref<16x128xbf16, #tpu.memory_space<vmem>>, %arg10: memref<16x384xbf16, #tpu.memory_space<vmem>>) attributes {dimension_semantics = [#tpu.dimension_semantics<parallel>], iteration_bounds = array<i64: 1>, scalar_prefetch = 0 : i64, scratch_operands = 1 : i64, tpu.core_type = #tpu.core_type<tc>, window_params = [{transform_indices = @transform_0, window_bounds = array<i64: 16, 297>}, {pipeline_mode = #tpu.pipeline_mode<synchronous>, transform_indices = @transform_1, window_bounds = array<i64: 384, 256>}, {pipeline_mode = #tpu.pipeline_mode<synchronous>, transform_indices = @transform_2, window_bounds = array<i64: 1, 256>}, {pipeline_mode = #tpu.pipeline_mode<synchronous>, transform_indices = @transform_3, window_bounds = array<i64: 256, 128>}, {pipeline_mode = #tpu.pipeline_mode<synchronous>, transform_indices = @transform_4, window_bounds = array<i64: 1, 128>}, {pipeline_mode = #tpu.pipeline_mode<synchronous>, transform_indices = @transform_5, window_bounds = array<i64: 128, 128>}, {pipeline_mode = #tpu.pipeline_mode<synchronous>, transform_indices = @transform_6, window_bounds = array<i64: 1, 128>}, {pipeline_mode = #tpu.pipeline_mode<synchronous>, transform_indices = @transform_7, window_bounds = array<i64: 128, 128>}, {transform_indices = @transform_8, window_bounds = array<i64: 16, 128>}]} {
    %cst = arith.constant 0.000000e+00 : bf16
    %0 = vector.broadcast %cst : bf16 to vector<16x384xbf16>
    %c0 = arith.constant 0 : index
    %c0_0 = arith.constant 0 : index
    %1 = vector.load %arg10[%c0, %c0_0] : memref<16x384xbf16, #tpu.memory_space<vmem>>, vector<16x384xbf16>
    tpu.vector_store %arg10[%c0, %c0_0], %0 {strides = array<i32>} : memref<16x384xbf16, #tpu.memory_space<vmem>>, vector<16x384xbf16>,
    %c0_1 = arith.constant 0 : index
    %c0_2 = arith.constant 0 : index
    %2 = vector.load %arg1[%c0_1, %c0_2] : memref<16x297xf32, #tpu.memory_space<vmem>>, vector<16x297xf32>
    %3 = arith.truncf %2 : vector<16x297xf32> to vector<16x297xbf16>
    %c0_3 = arith.constant 0 : index
    %c0_4 = arith.constant 0 : index
    %4 = vector.load %arg10[%c0_3, %c0_4] : memref<16x384xbf16, #tpu.memory_space<vmem>>, vector<16x297xbf16>
    tpu.vector_store %arg10[%c0_3, %c0_4], %3 {strides = array<i32>} : memref<16x384xbf16, #tpu.memory_space<vmem>>, vector<16x297xbf16>,
    %c0_5 = arith.constant 0 : index
    %c0_6 = arith.constant 0 : index
    %5 = vector.load %arg3[%c0_5, %c0_6] : memref<1x256xf32, #tpu.memory_space<vmem>>, vector<1x256xf32>
    %c0_7 = arith.constant 0 : index
    %c0_8 = arith.constant 0 : index
    %6 = vector.load %arg5[%c0_7, %c0_8] : memref<1x128xf32, #tpu.memory_space<vmem>>, vector<1x128xf32>
    %c0_9 = arith.constant 0 : index
    %c0_10 = arith.constant 0 : index
    %7 = vector.load %arg7[%c0_9, %c0_10] : memref<1x128xf32, #tpu.memory_space<vmem>>, vector<1x128xf32>
    %c0_11 = arith.constant 0 : index
    %c0_12 = arith.constant 0 : index
    %8 = vector.load %arg10[%c0_11, %c0_12] : memref<16x384xbf16, #tpu.memory_space<vmem>>, vector<16x384xbf16>
    %c0_13 = arith.constant 0 : index
    %c0_14 = arith.constant 0 : index
    %9 = vector.load %arg2[%c0_13, %c0_14] : memref<384x256xbf16, #tpu.memory_space<vmem>>, vector<384x256xbf16>
    %cst_15 = arith.constant dense<0.000000e+00> : vector<16x256xf32>
    %10 = tpu.matmul %8, %9, %cst_15 {dimension_numbers = #tpu.dot_dimension_numbers<[1], [0], [0], [1], [0, 0, 1, 1], [], []>} : vector<16x384xbf16>, vector<384x256xbf16>, vector<16x256xf32> -> vector<16x256xf32>
    %11 = vector.broadcast %5 : vector<1x256xf32> to vector<16x256xf32>
    %12 = arith.addf %10, %11 : vector<16x256xf32>
    %cst_16 = arith.constant 0.000000e+00 : f32
    %13 = vector.broadcast %cst_16 : f32 to vector<16x256xf32>
    %14 = arith.maximumf %12, %13 : vector<16x256xf32>
    %15 = arith.truncf %14 : vector<16x256xf32> to vector<16x256xbf16>
    %c0_17 = arith.constant 0 : index
    %c0_18 = arith.constant 0 : index
    %16 = vector.load %arg4[%c0_17, %c0_18] : memref<256x128xbf16, #tpu.memory_space<vmem>>, vector<256x128xbf16>
    %cst_19 = arith.constant dense<0.000000e+00> : vector<16x128xf32>
    %17 = tpu.matmul %15, %16, %cst_19 {dimension_numbers = #tpu.dot_dimension_numbers<[1], [0], [0], [1], [0, 0, 1, 1], [], []>} : vector<16x256xbf16>, vector<256x128xbf16>, vector<16x128xf32> -> vector<16x128xf32>
    %18 = vector.broadcast %6 : vector<1x128xf32> to vector<16x128xf32>
    %19 = arith.addf %17, %18 : vector<16x128xf32>
    %cst_20 = arith.constant 0.000000e+00 : f32
    %20 = vector.broadcast %cst_20 : f32 to vector<16x128xf32>
    %21 = arith.maximumf %19, %20 : vector<16x128xf32>
    %22 = arith.truncf %21 : vector<16x128xf32> to vector<16x128xbf16>
    %c0_21 = arith.constant 0 : index
    %c0_22 = arith.constant 0 : index
    %23 = vector.load %arg6[%c0_21, %c0_22] : memref<128x128xbf16, #tpu.memory_space<vmem>>, vector<128x128xbf16>
    %cst_23 = arith.constant dense<0.000000e+00> : vector<16x128xf32>
    %24 = tpu.matmul %22, %23, %cst_23 {dimension_numbers = #tpu.dot_dimension_numbers<[1], [0], [0], [1], [0, 0, 1, 1], [], []>} : vector<16x128xbf16>, vector<128x128xbf16>, vector<16x128xf32> -> vector<16x128xf32>
    %25 = vector.broadcast %7 : vector<1x128xf32> to vector<16x128xf32>
    %26 = arith.addf %24, %25 : vector<16x128xf32>
    %cst_24 = arith.constant 0.000000e+00 : f32
    %27 = vector.broadcast %cst_24 : f32 to vector<16x128xf32>
    %28 = arith.maximumf %26, %27 : vector<16x128xf32>
    %29 = arith.truncf %28 : vector<16x128xf32> to vector<16x128xbf16>
    %c0_25 = arith.constant 0 : index
    %c0_26 = arith.constant 0 : index
    %30 = vector.load %arg8[%c0_25, %c0_26] : memref<128x128xbf16, #tpu.memory_space<vmem>>, vector<128x128xbf16>
    %cst_27 = arith.constant dense<0.000000e+00> : vector<16x128xf32>
    %31 = tpu.matmul %29, %30, %cst_27 {dimension_numbers = #tpu.dot_dimension_numbers<[1], [0], [0], [1], [0, 0, 1, 1], [], []>} : vector<16x128xbf16>, vector<128x128xbf16>, vector<16x128xf32> -> vector<16x128xf32>
    %32 = arith.truncf %31 : vector<16x128xf32> to vector<16x128xbf16>
    %c0_28 = arith.constant 0 : index
    %c0_29 = arith.constant 0 : index
    %33 = vector.load %arg9[%c0_28, %c0_29] : memref<16x128xbf16, #tpu.memory_space<vmem>>, vector<16x128xbf16>
    tpu.vector_store %arg9[%c0_28, %c0_29], %32 {strides = array<i32>} : memref<16x128xbf16, #tpu.memory_space<vmem>>, vector<16x128xbf16>,
    return
  }
  func.func @transform_0(%arg0: i32) -> (i32, i32) {
    %c0_i32 = arith.constant 0 : i32
    %c0_i32_0 = arith.constant 0 : i32
    return %arg0, %c0_i32 : i32, i32
  }
  func.func @transform_1(%arg0: i32) -> (i32, i32) {
    %c0_i32 = arith.constant 0 : i32
    %c0_i32_0 = arith.constant 0 : i32
    %c0_i32_1 = arith.constant 0 : i32
    return %c0_i32, %c0_i32_0 : i32, i32
  }
  func.func @transform_2(%arg0: i32) -> (i32, i32) {
    %c0_i32 = arith.constant 0 : i32
    %c0_i32_0 = arith.constant 0 : i32
    %c0_i32_1 = arith.constant 0 : i32
    return %c0_i32, %c0_i32_0 : i32, i32
  }
  func.func @transform_3(%arg0: i32) -> (i32, i32) {
    %c0_i32 = arith.constant 0 : i32
    %c0_i32_0 = arith.constant 0 : i32
    %c0_i32_1 = arith.constant 0 : i32
    return %c0_i32, %c0_i32_0 : i32, i32
  }
  func.func @transform_4(%arg0: i32) -> (i32, i32) {
    %c0_i32 = arith.constant 0 : i32
    %c0_i32_0 = arith.constant 0 : i32
    %c0_i32_1 = arith.constant 0 : i32
    return %c0_i32, %c0_i32_0 : i32, i32
  }
  func.func @transform_5(%arg0: i32) -> (i32, i32) {
    %c0_i32 = arith.constant 0 : i32
    %c0_i32_0 = arith.constant 0 : i32
    %c0_i32_1 = arith.constant 0 : i32
    return %c0_i32, %c0_i32_0 : i32, i32
  }
  func.func @transform_6(%arg0: i32) -> (i32, i32) {
    %c0_i32 = arith.constant 0 : i32
    %c0_i32_0 = arith.constant 0 : i32
    %c0_i32_1 = arith.constant 0 : i32
    return %c0_i32, %c0_i32_0 : i32, i32
  }
  func.func @transform_7(%arg0: i32) -> (i32, i32) {
    %c0_i32 = arith.constant 0 : i32
    %c0_i32_0 = arith.constant 0 : i32
    %c0_i32_1 = arith.constant 0 : i32
    return %c0_i32, %c0_i32_0 : i32, i32
  }
  func.func @transform_8(%arg0: i32) -> (i32, i32) {
    %c0_i32 = arith.constant 0 : i32
    %c0_i32_0 = arith.constant 0 : i32
    return %arg0, %c0_i32 : i32, i32
  }
}

</mosaic_0001>

<bundles_post_ra>
// kernel: tpu_custom_call.1
= control target key start
LH: loop header
LB: loop body
LE: loop exit
PB: predicated region body
PF: predicated region fallthrough
CT: control target
= control target key end

     0   :  { %13 = vsyncpa [#allocation4], 0  ;;  %s1616_s0 = inlined_call_operand.hbm [shape: f32[16,297], index: 0, kind: input, shape index: {}]   ;;  %s1617_s1 = inlined_call_operand.hbm [shape: bf16[384,256], index: 1, kind: input, shape index: {}]   ;;  %s1618_s2 = inlined_call_operand.hbm [shape: f32[1,256], index: 2, kind: input, shape index: {}]   ;;  %s1619_s3 = inlined_call_operand.hbm [shape: bf16[256,128], index: 3, kind: input, shape index: {}]   ;;  %s1620_s4 = inlined_call_operand.vmem [shape: f32[1,128], index: 4, kind: input, shape index: {}]   ;;  %s1621_s5 = inlined_call_operand.hbm [shape: bf16[128,128], index: 5, kind: input, shape index: {}]   ;;  %s1622_s6 = inlined_call_operand.vmem [shape: f32[1,128], index: 6, kind: input, shape index: {}]   ;;  %s1623_s7 = inlined_call_operand.hbm [shape: bf16[128,128], index: 7, kind: input, shape index: {}]   ;;  %s1624_s8 = inlined_call_operand.hbm [shape: bf16[16,128], index: 8, kind: output, shape index: {}]  }
   0x1   :  { %14 = vsyncpa [#allocation7], 0 }
   0x2   :  { %15 = vsyncpa [#allocation10], 0 }
   0x3   :  { %16 = vsyncpa [#allocation13], 0  ;;  %s35_s29 = sshll.u32 %s1617_s1, 4  ;;  %s36_s29 = int_to_ptr.hbm [resolvable:$true] %s35_s29 }
   0x4   :  { %17 = vsyncpa [#allocation5], 0  ;;  %s1512_s30 = smov [#allocation6]   ;;  %s59_s12 = sshll.u32 %s1619_s3, 4  ;;  %s60_s12 = int_to_ptr.hbm [resolvable:$true] %s59_s12 }
   0x5   :  { %s37_s9 = sshll.u32 %s1512_s30, 4  ;;  %s1513_s13 = smov 128   ;;  %s38_s9 = int_to_ptr.vmem [resolvable:$true] %s37_s9 }
   0x6   :  { %s1514_s14 = smov 8   ;;  %s1515_s15 = smov [#allocation9]  }
   0x7   :  { %43 = dma.hbm_to_vmem [thread:$0]  %s36_s29, 6144, %s38_s9, [#allocation7], %s1513_s13, %s1513_s13, %s1514_s14  }
   0x8   :  { %s61_s16 = sshll.u32 %s1515_s15, 4  ;;  %s1516_s17 = smov 64   ;;  %s62_s16 = int_to_ptr.vmem [resolvable:$true] %s61_s16 }
   0x9   :  { %s1517_s18 = smov 4   ;;  %s22_s20 = sshll.u32 %s1616_s0, 4  ;;  %s23_s20 = int_to_ptr.hbm [resolvable:$true] %s22_s20 }
   0xa   :  { %67 = dma.hbm_to_vmem [thread:$0]  %s60_s12, 2048, %s62_s16, [#allocation10], %s1516_s17, %s1516_s17, %s1517_s18  }
   0xb   :  { %s1518_s21 = smov [#allocation3]   ;;  %s49_s24 = sshll.u32 %s1618_s2, 4  ;;  %s50_s24 = int_to_ptr.hbm [resolvable:$true] %s49_s24 }
   0xc   :  { %s24_s3 = sshll.u32 %s1518_s21, 4  ;;  %s1519_s25 = smov 384   ;;  %s25_s3 = int_to_ptr.vmem [resolvable:$true] %s24_s3 }
   0xd   :  { %s1520_s26 = smov 24   ;;  %s1521_s27 = smov [#allocation8]  }
   0xe   :  { %30 = dma.hbm_to_vmem [thread:$0]  %s23_s20, 768, %s25_s3, [#allocation4], %s1519_s25, %s1519_s25, %s1520_s26  }
   0xf   :  { %s51_s28 = sshll.u32 %s1521_s27, 4  ;;  %s74_s9 = sshll.u32 %s1621_s5, 4  ;;  %s52_s28 = int_to_ptr.vmem [resolvable:$true] %s51_s28  ;;  %s75_s9 = int_to_ptr.hbm [resolvable:$true] %s74_s9 }
  0x10   :  { %54 = dma.hbm_to_vmem [thread:$0]  %s50_s24, 32, %s52_s28, [#allocation7]  }
  0x11   :  { %s89_s11 = sshll.u32 %s1623_s7, 4  ;;  %s1522_s12 = smov [#allocation11]   ;;  %s90_s11 = int_to_ptr.hbm [resolvable:$true] %s89_s11 }
  0x12   :  { %s76_s13 = sshll.u32 %s1522_s12, 4  ;;  %s1523_s2 = smov [#allocation12]   ;;  %s77_s13 = int_to_ptr.vmem [resolvable:$true] %s76_s13 }
  0x13   :  { %82 = dma.hbm_to_vmem [thread:$0]  %s75_s9, 1024, %s77_s13, [#allocation10], %s1516_s17, %s1516_s17, %s1517_s18  }
  0x14   :  { %s91_s14 = sshll.u32 %s1523_s2, 4  ;;  %s92_s14 = int_to_ptr.vmem [resolvable:$true] %s91_s14 }
  0x15   :  { %97 = dma.hbm_to_vmem [thread:$0]  %s90_s11, 1024, %s92_s14, [#allocation13], %s1516_s17, %s1516_s17, %s1517_s18  }
  0x16   :  { %1502 = dma.done.wait [#allocation4], 768  }
  0x17   :  { %1503 = vsyncadd [#allocation4], 4294966528 }
  0x18   :  { %1504 = dma.done.wait [#allocation7], 6176  }
  0x19   :  { %1505 = vsyncadd [#allocation7], 4294961120 }
  0x1a   :  { %1506 = dma.done.wait [#allocation10], 3072  }
  0x1b   :  { %1507 = vsyncadd [#allocation10], 4294964224 }
  0x1c   :  { %1508 = dma.done.wait [#allocation13], 1024  }
  0x1d   :  { %1509 = vsyncadd [#allocation13], 4294966272  ;;  %v1524_v0 = vmov 0   ;;  %v968_v1 = vld [vmem:[#allocation6 + $0x70] sm:$0xf]  ;;  %vm138_vm0 = vcmask 330752  }
  0x1e   :  { %124 = vst [vmem:[#allocation2 + $0x8] sm:$0xf] %v1524_v0  ;;  %v1248_v2 = vld [vmem:[#allocation6 + $0x74] sm:$0xf0]  ;;  %v1032_v3 = vld [vmem:[#allocation6 + $0xf0] sm:$0xf] }
  0x1f   :  { %126 = vst [vmem:[#allocation2 + $0x14] sm:$0xf] %v1524_v0  ;;  %v969_v4 = vor.u32 %v1248_v2, %v968_v1  ;;  %v1264_v5 = vld [vmem:[#allocation6 + $0xf4] sm:$0xf0]  ;;  %v1096_v6 = vld [vmem:[#allocation6 + $0x170] sm:$0xf] }
  0x20   :  { %v1280_v7 = vld [vmem:[#allocation6 + $0x174] sm:$0xf0]  ;;  %v1033_v8 = vor.u32 %v1264_v5, %v1032_v3  ;;  %v960_v10 = vld [vmem:[#allocation6 + $0x60] sm:$0xf]  ;;  %v1246_v11 = vld [vmem:[#allocation6 + $0x64] sm:$0xf0] }
  0x21   :  { %v1097_v9 = vor.u32 %v1280_v7, %v1096_v6  ;;  %v1024_v12 = vld [vmem:[#allocation6 + $0xe0] sm:$0xf]  ;;  %458 = vmatpush.bf16.msra.mxu0 %v969_v4  ;;  %v961_v13 = vor.u32 %v1246_v11, %v960_v10  ;;  %v1262_v14 = vld [vmem:[#allocation6 + $0xe4] sm:$0xf0]  ;;  %v952_v19 = vld [vmem:[#allocation6 + $0x50] sm:$0xf] }
  0x22   :  { %v1088_v15 = vld [vmem:[#allocation6 + $0x160] sm:$0xf]  ;;  %v1278_v16 = vld [vmem:[#allocation6 + $0x164] sm:$0xf0]  ;;  %472 = vmatpush.bf16.msra.mxu1 %v1033_v8  ;;  %v1025_v17 = vor.u32 %v1262_v14, %v1024_v12  ;;  %v1244_v20 = vld [vmem:[#allocation6 + $0x54] sm:$0xf0] }
  0x23   :  { %486 = vmatpush.bf16.msra.mxu2 %v1097_v9  ;;  %v1089_v18 = vor.u32 %v1278_v16, %v1088_v15  ;;  %v1016_v21 = vld [vmem:[#allocation6 + $0xd0] sm:$0xf]  ;;  %v1260_v22 = vld [vmem:[#allocation6 + $0xd4] sm:$0xf0]  ;;  %v953_v25 = vor.u32 %v1244_v20, %v952_v19  ;;  %v944_v26 = vld [vmem:[#allocation6 + $0x40] sm:$0xf] }
  0x24   :  { %v1080_v23 = vld [vmem:[#allocation6 + $0x150] sm:$0xf]  ;;  %v1276_v24 = vld [vmem:[#allocation6 + $0x154] sm:$0xf0]  ;;  %v1242_v27 = vld [vmem:[#allocation6 + $0x44] sm:$0xf0]  ;;  %v1017_v28 = vor.u32 %v1260_v22, %v1016_v21 }
  0x25   :  { %459 = vmatpush.bf16.msra.mxu0 %v961_v13  ;;  %v1081_v29 = vor.u32 %v1276_v24, %v1080_v23  ;;  %v1008_v30 = vld [vmem:[#allocation6 + $0xc0] sm:$0xf]  ;;  %v1247_v31 = vld [vmem:[#allocation6 + $0x74] sm:$0xf]  ;;  %v970_v32 = vld [vmem:[#allocation6 + $0x78] sm:$0xf0]  ;;  %v945_v38 = vor.u32 %v1242_v27, %v944_v26 }
  0x26   :  { %473 = vmatpush.bf16.msra.mxu1 %v1025_v17  ;;  %v1258_v33 = vld [vmem:[#allocation6 + $0xc4] sm:$0xf0]  ;;  %v1072_v34 = vld [vmem:[#allocation6 + $0x140] sm:$0xf]  ;;  %v973_v36 = vor.u32 %v1247_v31, %v970_v32  ;;  %v1245_v37 = vld [vmem:[#allocation6 + $0x64] sm:$0xf] }
  0x27   :  { %487 = vmatpush.bf16.msra.mxu2 %v1089_v18  ;;  %v1274_v35 = vld [vmem:[#allocation6 + $0x144] sm:$0xf0]  ;;  %v936_v39 = vld [vmem:[#allocation6 + $0x30] sm:$0xf]  ;;  %v1240_v40 = vld [vmem:[#allocation6 + $0x34] sm:$0xf0]  ;;  %v1009_v42 = vor.u32 %v1258_v33, %v1008_v30 }
  0x28   :  { %500 = vmatpush.bf16.msra.mxu3 %v973_v36  ;;  %v962_v41 = vld [vmem:[#allocation6 + $0x68] sm:$0xf0]  ;;  %v1073_v43 = vor.u32 %v1274_v35, %v1072_v34  ;;  %v1000_v44 = vld [vmem:[#allocation6 + $0xb0] sm:$0xf]  ;;  %v1256_v45 = vld [vmem:[#allocation6 + $0xb4] sm:$0xf0]  ;;  %v937_v51 = vor.u32 %v1240_v40, %v936_v39 }
  0x29   :  { %460 = vmatpush.bf16.msra.mxu0 %v953_v25  ;;  %v1064_v46 = vld [vmem:[#allocation6 + $0x130] sm:$0xf]  ;;  %v965_v47 = vor.u32 %v1245_v37, %v962_v41  ;;  %v1272_v48 = vld [vmem:[#allocation6 + $0x134] sm:$0xf0]  ;;  %v1243_v49 = vld [vmem:[#allocation6 + $0x54] sm:$0xf]  ;;  %v1001_v55 = vor.u32 %v1256_v45, %v1000_v44 }
  0x2a   :  { %474 = vmatpush.bf16.msra.mxu1 %v1017_v28  ;;  %v954_v50 = vld [vmem:[#allocation6 + $0x58] sm:$0xf0]  ;;  %v928_v52 = vld [vmem:[#allocation6 + $0x20] sm:$0xf]  ;;  %v1238_v53 = vld [vmem:[#allocation6 + $0x24] sm:$0xf0]  ;;  %v1065_v56 = vor.u32 %v1272_v48, %v1064_v46 }
  0x2b   :  { %488 = vmatpush.bf16.msra.mxu2 %v1081_v29  ;;  %v957_v54 = vor.u32 %v1243_v49, %v954_v50  ;;  %v992_v57 = vld [vmem:[#allocation6 + $0xa0] sm:$0xf]  ;;  %v1241_v58 = vld [vmem:[#allocation6 + $0x44] sm:$0xf]  ;;  %v946_v59 = vld [vmem:[#allocation6 + $0x48] sm:$0xf0]  ;;  %v929_v1 = vor.u32 %v1238_v53, %v928_v52 }
  0x2c   :  { %501 = vmatpush.bf16.msra.mxu3 %v965_v47  ;;  %v1254_v60 = vld [vmem:[#allocation6 + $0xa4] sm:$0xf0]  ;;  %v1056_v61 = vld [vmem:[#allocation6 + $0x120] sm:$0xf]  ;;  %v920_v63 = vld [vmem:[#allocation6 + $0x10] sm:$0xf]  ;;  %v949_v6 = vor.u32 %v1241_v58, %v946_v59 }
  0x2d   :  { %461 = vmatpush.bf16.msra.mxu0 %v945_v38  ;;  %v1270_v62 = vld [vmem:[#allocation6 + $0x124] sm:$0xf0]  ;;  %v1236_v0 = vld [vmem:[#allocation6 + $0x14] sm:$0xf0]  ;;  %v984_v2 = vld [vmem:[#allocation6 + $0x90] sm:$0xf]  ;;  %v993_v7 = vor.u32 %v1254_v60, %v992_v57 }
  0x2e   :  { %475 = vmatpush.bf16.msra.mxu1 %v1009_v42  ;;  %v1252_v3 = vld [vmem:[#allocation6 + $0x94] sm:$0xf0]  ;;  %v1048_v4 = vld [vmem:[#allocation6 + $0x110] sm:$0xf]  ;;  %v1057_v8 = vor.u32 %v1270_v62, %v1056_v61  ;;  %v1239_v9 = vld [vmem:[#allocation6 + $0x34] sm:$0xf]  ;;  %v921_v22 = vor.u32 %v1236_v0, %v920_v63 }
  0x2f   :  { %489 = vmatpush.bf16.msra.mxu2 %v1073_v43  ;;  %v1268_v5 = vld [vmem:[#allocation6 + $0x114] sm:$0xf0]  ;;  %v938_v10 = vld [vmem:[#allocation6 + $0x38] sm:$0xf0]  ;;  %v129_v11 = vld [vmem:[#allocation3 + $0x10] sm:$0xff]  ;;  %v985_v29 = vor.u32 %v1252_v3, %v984_v2  ;;  %s1525_s16 = smov [#allocation14]  }
  0x30   :  { %502 = vmatpush.bf16.msra.mxu3 %v957_v54  ;;  %v132_v12 = vld [vmem:[#allocation3 + $0x28] sm:$0xff]  ;;  %v134_v13 = vpack.c.bf16 %v129_v11, %v129_v11  ;;  %v127_v14 = vld [vmem:[#allocation3] sm:$0xff]  ;;  %v912_v16 = vld [vmem:[#allocation6] sm:$0xf]  ;;  %v941_v27 = vor.u32 %v1239_v9, %v938_v10  ;;  %v1049_v30 = vor.u32 %v1268_v5, %v1048_v4  ;;  %s880_s1 = sshll.u32 %s1525_s16, 4  ;;  %s882_s21 = sshll.u32 %s1624_s8, 4  ;;  %s881_s1 = int_to_ptr.vmem [resolvable:$true] %s880_s1  ;;  %s883_s21 = int_to_ptr.hbm [resolvable:$true] %s882_s21 }
  0x31   :  { %462 = vmatpush.bf16.msra.mxu0 %v937_v51  ;;  %v128_v15 = vld [vmem:[#allocation3 + $0x8] sm:$0xff]  ;;  %v1234_v17 = vld [vmem:[#allocation6 + $0x4] sm:$0xf0]  ;;  %v136_v18 = vpack.c.bf16 %v132_v12, %v132_v12  ;;  %v131_v20 = vld [vmem:[#allocation3 + $0x20] sm:$0xff] }
  0x32   :  { %476 = vmatpush.bf16.msra.mxu1 %v1001_v55  ;;  %v130_v19 = vld [vmem:[#allocation3 + $0x18] sm:$0xff]  ;;  %v133_v21 = vpack.c.bf16 %v128_v15, %v127_v14  ;;  %v976_v23 = vld [vmem:[#allocation6 + $0x80] sm:$0xf]  ;;  %139 = vst.msk [vmem:[#allocation2 + $0x8] sm:$0xf] %vm138_vm0, %v134_v13  ;;  %v913_v37 = vor.u32 %v1234_v17, %v912_v16  ;;  %v1287_v11 = vld [vmem:[#allocation9 + $0x30] sm:$0xff] }
  0x33   :  { %490 = vmatpush.bf16.msra.mxu2 %v1065_v56  ;;  %v1250_v24 = vld [vmem:[#allocation6 + $0x84] sm:$0xf0]  ;;  %v1040_v25 = vld [vmem:[#allocation6 + $0x100] sm:$0xf]  ;;  %v135_v28 = vpack.c.bf16 %v131_v20, %v130_v19  ;;  %141 = vst.msk [vmem:[#allocation2 + $0x14] sm:$0xf] %vm138_vm0, %v136_v18 }
  0x34   :  { %503 = vmatpush.bf16.msra.mxu3 %v949_v6  ;;  %v1266_v26 = vld [vmem:[#allocation6 + $0x104] sm:$0xf0]  ;;  %v1237_v31 = vld [vmem:[#allocation6 + $0x24] sm:$0xf]  ;;  %v930_v32 = vld [vmem:[#allocation6 + $0x28] sm:$0xf0]  ;;  %v977_v39 = vor.u32 %v1250_v24, %v976_v23 }
  0x35   :  { %463 = vmatpush.bf16.msra.mxu0 %v929_v1  ;;  %v1263_v33 = vld [vmem:[#allocation6 + $0xf4] sm:$0xf]  ;;  %v1034_v34 = vld [vmem:[#allocation6 + $0xf8] sm:$0xf0]  ;;  %137 = vst [vmem:[#allocation2] sm:$0xff] %v133_v21  ;;  %v933_v38 = vor.u32 %v1237_v31, %v930_v32  ;;  %v1041_v40 = vor.u32 %v1266_v26, %v1040_v25  ;;  %v1286_v18 = vld [vmem:[#allocation9 + $0x28] sm:$0xff] }
  0x36   :  { %477 = vmatpush.bf16.msra.mxu1 %v993_v7  ;;  %v1279_v35 = vld [vmem:[#allocation6 + $0x174] sm:$0xf]  ;;  %v1098_v36 = vld [vmem:[#allocation6 + $0x178] sm:$0xf0]  ;;  %140 = vst [vmem:[#allocation2 + $0xc] sm:$0xff] %v135_v28  ;;  %v1037_v43 = vor.u32 %v1263_v33, %v1034_v34 }
  0x37   :  { %491 = vmatpush.bf16.msra.mxu2 %v1057_v8  ;;  %v1235_v41 = vld [vmem:[#allocation6 + $0x14] sm:$0xf]  ;;  %v922_v42 = vld [vmem:[#allocation6 + $0x18] sm:$0xf0]  ;;  %v1101_v44 = vor.u32 %v1279_v35, %v1098_v36  ;;  %v1261_v45 = vld [vmem:[#allocation6 + $0xe4] sm:$0xf] }
  0x38   :  { %504 = vmatpush.bf16.msra.mxu3 %v941_v27  ;;  %v1026_v46 = vld [vmem:[#allocation6 + $0xe8] sm:$0xf0]  ;;  %v1277_v48 = vld [vmem:[#allocation6 + $0x164] sm:$0xf]  ;;  %v925_v51 = vor.u32 %v1235_v41, %v922_v42  ;;  %v1259_v61 = vld [vmem:[#allocation6 + $0xd4] sm:$0xf] }
  0x39   :  { %464 = vmatpush.bf16.msra.mxu0 %v921_v22  ;;  %v908_v47 = vld [vmem:[#allocation2 + $0x8] sm:$0xf]  ;;  %v1090_v49 = vld [vmem:[#allocation6 + $0x168] sm:$0xf0]  ;;  %v1233_v52 = vld [vmem:[#allocation6 + $0x4] sm:$0xf]  ;;  %v1029_v58 = vor.u32 %v1261_v45, %v1026_v46 }
  0x3a   :  { %478 = vmatpush.bf16.msra.mxu1 %v985_v29  ;;  %v1232_v50 = vld [vmem:[#allocation2 + $0x10] sm:$0xf0]  ;;  %v1093_v59 = vor.u32 %v1277_v48, %v1090_v49  ;;  %v1018_v0 = vld [vmem:[#allocation6 + $0xd8] sm:$0xf0]  ;;  %v1275_v1 = vld [vmem:[#allocation6 + $0x154] sm:$0xf] }
  0x3b   :  { %492 = vmatpush.bf16.msra.mxu2 %v1049_v30  ;;  %v1600_v53 = vor.u32 %v1232_v50, %v908_v47  ;;  %v914_v56 = vld [vmem:[#allocation6 + $0x8] sm:$0xf0]  ;;  %v1082_v2 = vld [vmem:[#allocation6 + $0x158] sm:$0xf0]  ;;  %v1021_v4 = vor.u32 %v1259_v61, %v1018_v0  ;;  %v1257_v6 = vld [vmem:[#allocation6 + $0xc4] sm:$0xf] }
  0x3c   :  { %505 = vmatpush.bf16.msra.mxu3 %v933_v38  ;;  %v900_v54 = vld [vmem:[#allocation2] sm:$0xf]  ;;  %v1230_v55 = vld [vmem:[#allocation2 + $0x4] sm:$0xf]  ;;  %v917_v3 = vor.u32 %v1233_v52, %v914_v56  ;;  %v1085_v5 = vor.u32 %v1275_v1, %v1082_v2  ;;  %v1010_v7 = vld [vmem:[#allocation6 + $0xc8] sm:$0xf0] }
  0x3d   :  { %465 = vmatpush.bf16.msra.mxu0 %v913_v37  ;;  %v1231_v57 = vld [vmem:[#allocation2 + $0x8] sm:$0xf0]  ;;  %v902_v60 = vld [vmem:[#allocation2 + $0xc] sm:$0xf0]  ;;  %v1288_v8 = vld [vmem:[#allocation9 + $0x38] sm:$0xff]  ;;  %v1013_v12 = vor.u32 %v1257_v6, %v1010_v7 }
  0x3e   :  { %479 = vmatpush.bf16.msra.mxu1 %v977_v39  ;;  %v901_v62 = vor.u32 %v1231_v57, %v900_v54  ;;  %v905_v63 = vor.u32 %v1230_v55, %v902_v60  ;;  %v1273_v9 = vld [vmem:[#allocation6 + $0x144] sm:$0xf]  ;;  %v1074_v10 = vld [vmem:[#allocation6 + $0x148] sm:$0xf0]  ;;  %v1255_v14 = vld [vmem:[#allocation6 + $0xb4] sm:$0xf] }
  0x3f   :  { %493 = vmatpush.bf16.msra.mxu2 %v1041_v40  ;;  %v1077_v13 = vor.u32 %v1273_v9, %v1074_v10  ;;  %v1002_v15 = vld [vmem:[#allocation6 + $0xb8] sm:$0xf0]  ;;  %v1271_v16 = vld [vmem:[#allocation6 + $0x134] sm:$0xf]  ;;  %v1253_v21 = vld [vmem:[#allocation6 + $0xa4] sm:$0xf] }
  0x40   :  { %506 = vmatpush.bf16.msra.mxu3 %v925_v51  ;;  %466 = vmatmul.bf16.vlgmr.msra.gmra.mxu0 %v901_v62  ;;  %v1066_v17 = vld [vmem:[#allocation6 + $0x138] sm:$0xf0]  ;;  %v1005_v19 = vor.u32 %v1255_v14, %v1002_v15  ;;  %v994_v22 = vld [vmem:[#allocation6 + $0xa8] sm:$0xf0]  ;;  %v1269_v23 = vld [vmem:[#allocation6 + $0x124] sm:$0xf] }
  0x41   :  { %514 = vmatpush.bf16.msrb.mxu0 %v1037_v43  ;;  %480 = vmatmul.bf16.vlgmr.msra.gmra.mxu1 %v905_v63  ;;  %v1069_v20 = vor.u32 %v1271_v16, %v1066_v17  ;;  %v1058_v24 = vld [vmem:[#allocation6 + $0x128] sm:$0xf0]  ;;  %v997_v25 = vor.u32 %v1253_v21, %v994_v22  ;;  %v1251_v27 = vld [vmem:[#allocation6 + $0x94] sm:$0xf]  ;;  %v986_v28 = vld [vmem:[#allocation6 + $0x98] sm:$0xf0] }
  0x42   :  { %528 = vmatpush.bf16.msrb.mxu1 %v1101_v44  ;;  %494 = vmatmul.bf16.vlgmr.msra.gmra.mxu2 %v1600_v53  ;;  %v1061_v26 = vor.u32 %v1269_v23, %v1058_v24  ;;  %v1267_v29 = vld [vmem:[#allocation6 + $0x114] sm:$0xf]  ;;  %v1050_v30 = vld [vmem:[#allocation6 + $0x118] sm:$0xf0]  ;;  %v989_v31 = vor.u32 %v1251_v27, %v986_v28  ;;  %v1249_v33 = vld [vmem:[#allocation6 + $0x84] sm:$0xf] }
  0x43   :  { %679 = vmatpush.bf16.msrb.mxu2 %v1288_v8  ;;  %v1053_v32 = vor.u32 %v1267_v29, %v1050_v30  ;;  %v978_v34 = vld [vmem:[#allocation6 + $0x88] sm:$0xf0]  ;;  %v1265_v35 = vld [vmem:[#allocation6 + $0x104] sm:$0xf]  ;;  %v1284_v40 = vld [vmem:[#allocation9 + $0x18] sm:$0xff] }
  0x44   :  { %507 = vmatpush.bf16.msra.mxu3 %v917_v3  ;;  %v1042_v36 = vld [vmem:[#allocation6 + $0x108] sm:$0xf0]  ;;  %v981_v37 = vor.u32 %v1249_v33, %v978_v34  ;;  %v1285_v39 = vld [vmem:[#allocation9 + $0x20] sm:$0xff]  ;;  %v1283_v41 = vld [vmem:[#allocation9 + $0x10] sm:$0xff] }
  0x45   :  { %515 = vmatpush.bf16.msrb.mxu0 %v1029_v58  ;;  %v1045_v38 = vor.u32 %v1265_v35, %v1042_v36  ;;  %v1282_v42 = vld [vmem:[#allocation9 + $0x8] sm:$0xff]  ;;  %v1296_v43 = vld [vmem:[#allocation9 + $0x78] sm:$0xff]  ;;  %v1281_v44 = vld [vmem:[#allocation9] sm:$0xff] }
  0x46   :  { %529 = vmatpush.bf16.msrb.mxu1 %v1093_v59  ;;  %v1295_v45 = vld [vmem:[#allocation9 + $0x70] sm:$0xff]  ;;  %v1294_v46 = vld [vmem:[#allocation9 + $0x68] sm:$0xff]  ;;  %v1293_v47 = vld [vmem:[#allocation9 + $0x60] sm:$0xff] }
  0x47   :  { %508 = vmatmul.bf16.vlgmr.msra.gmra.mxu3 %v901_v62  ;;  %680 = vmatpush.bf16.msrb.mxu2 %v1287_v11  ;;  %v142_v48 = vld [vmem:[#allocation8] sm:$0x3]  ;;  %v1290_v55 = vld [vmem:[#allocation9 + $0x48] sm:$0xff]  ;;  %v1289_v60 = vld [vmem:[#allocation9 + $0x40] sm:$0xff] }
  0x48   :  { %693 = vmatpush.bf16.msrb.mxu3 %v1296_v43  ;;  %v1292_v49 = vld [vmem:[#allocation9 + $0x58] sm:$0xff]  ;;  %v198_v50 = vperm.slane %v142_v48, 0  ;;  %v199_v6 = vperm.slane %v142_v48, 1  ;;  %v1303_v22 = vld [vmem:[#allocation11 + $0x30] sm:$0xff]  ;;  %v1302_v23 = vld [vmem:[#allocation11 + $0x28] sm:$0xff] }
  0x49   :  { %516 = vmatpush.bf16.msrb.mxu0 %v1021_v4  ;;  %v1304_v21 = vld [vmem:[#allocation11 + $0x38] sm:$0xff]  ;;  %v1301_v24 = vld [vmem:[#allocation11 + $0x20] sm:$0xff]  ;;  %v1298_v27 = vld [vmem:[#allocation11 + $0x8] sm:$0xff] }
  0x4a   :  { %530 = vmatpush.bf16.msrb.mxu1 %v1085_v5  ;;  %v1297_v28 = vld [vmem:[#allocation11] sm:$0xff]  ;;  %v1312_v29 = vld [vmem:[#allocation12 + $0x38] sm:$0xff]  ;;  %v1311_v30 = vld [vmem:[#allocation12 + $0x30] sm:$0xff] }
  0x4b   :  { %681 = vmatpush.bf16.msrb.mxu2 %v1286_v18  ;;  %v1332_v35 = vld [vmem:[%s1620_s4] ss:$0 sm:$0xff]  ;;  %v1305_v48 = vld [vmem:[#allocation12] sm:$0xff] }
  0x4c   :  { %694 = vmatpush.bf16.msrb.mxu3 %v1295_v45  ;;  %v1308_v45 = vld [vmem:[#allocation12 + $0x18] sm:$0xff] }
  0x4d   :  { %517 = vmatpush.bf16.msrb.mxu0 %v1013_v12 }
  0x4e   :  { %531 = vmatpush.bf16.msrb.mxu1 %v1077_v13 }
  0x4f   :  { %682 = vmatpush.bf16.msrb.mxu2 %v1285_v39 }
  0x50   :  { %695 = vmatpush.bf16.msrb.mxu3 %v1294_v46  ;;  %v1307_v46 = vld [vmem:[#allocation12 + $0x10] sm:$0xff] }
  0x51   :  { %518 = vmatpush.bf16.msrb.mxu0 %v1005_v19 }
  0x52   :  { %532 = vmatpush.bf16.msrb.mxu1 %v1069_v20 }
  0x53   :  { %683 = vmatpush.bf16.msrb.mxu2 %v1284_v40 }
  0x54   :  { %696 = vmatpush.bf16.msrb.mxu3 %v1293_v47  ;;  %v1306_v47 = vld [vmem:[#allocation12 + $0x8] sm:$0xff] }
  0x55   :  { %519 = vmatpush.bf16.msrb.mxu0 %v997_v25  ;;  %v1300_v25 = vld [vmem:[#allocation11 + $0x18] sm:$0xff] }
  0x56   :  { %533 = vmatpush.bf16.msrb.mxu1 %v1061_v26  ;;  %v1299_v26 = vld [vmem:[#allocation11 + $0x10] sm:$0xff] }
  0x57   :  { %684 = vmatpush.bf16.msrb.mxu2 %v1283_v41 }
  0x58   :  { %697 = vmatpush.bf16.msrb.mxu3 %v1292_v49 }
  0x59   :  { %520 = vmatpush.bf16.msrb.mxu0 %v989_v31  ;;  %v1310_v31 = vld [vmem:[#allocation12 + $0x28] sm:$0xff] }
  0x5a   :  { %534 = vmatpush.bf16.msrb.mxu1 %v1053_v32  ;;  %v1309_v32 = vld [vmem:[#allocation12 + $0x20] sm:$0xff] }
  0x5b   :  { %685 = vmatpush.bf16.msrb.mxu2 %v1282_v42 }
  0x5d   :  { %521 = vmatpush.bf16.msrb.mxu0 %v981_v37 }
  0x5e   :  { %535 = vmatpush.bf16.msrb.mxu1 %v1045_v38 }
  0x5f   :  { %686 = vmatpush.bf16.msrb.mxu2 %v1281_v44 }
  0x60   :  { %522 = vmatmul.bf16.vlgmr.msrb.gmra.mxu0 %v905_v63 }
  0x61   :  { %536 = vmatmul.bf16.vlgmr.msrb.gmra.mxu1 %v1600_v53  ;;  %v1291_v53 = vld [vmem:[#allocation9 + $0x50] sm:$0xff]  ;;  %777 = vmatpush.bf16.msra.mxu0 %v1304_v21 }
  0x62   :  { %698 = vmatpush.bf16.msrb.mxu3 %v1291_v53  ;;  %858 = vmatpush.bf16.msra.mxu1 %v1312_v29 }
  0x65   :  { %778 = vmatpush.bf16.msra.mxu0 %v1303_v22 }
  0x66   :  { %699 = vmatpush.bf16.msrb.mxu3 %v1290_v55  ;;  %859 = vmatpush.bf16.msra.mxu1 %v1311_v30 }
  0x69   :  { %779 = vmatpush.bf16.msra.mxu0 %v1302_v23 }
  0x6a   :  { %700 = vmatpush.bf16.msrb.mxu3 %v1289_v60  ;;  %860 = vmatpush.bf16.msra.mxu1 %v1310_v31 }
  0x6d   :  { %780 = vmatpush.bf16.msra.mxu0 %v1301_v24 }
  0x6e   :  { %861 = vmatpush.bf16.msra.mxu1 %v1309_v32 }
  0x71   :  { %781 = vmatpush.bf16.msra.mxu0 %v1300_v25 }
  0x72   :  { %862 = vmatpush.bf16.msra.mxu1 %v1308_v45 }
  0x75   :  { %782 = vmatpush.bf16.msra.mxu0 %v1299_v26 }
  0x76   :  { %863 = vmatpush.bf16.msra.mxu1 %v1307_v46 }
  0x79   :  { %783 = vmatpush.bf16.msra.mxu0 %v1298_v27 }
  0x7a   :  { %864 = vmatpush.bf16.msra.mxu1 %v1306_v47 }
  0x7d   :  { %784 = vmatpush.bf16.msra.mxu0 %v1297_v28 }
  0x7e   :  { %865 = vmatpush.bf16.msra.mxu1 %v1305_v48 }
  0xbd   :  { %v467_v51 = vpop.f32.mrf.mxu0 }
  0xbe   :  { %v481_v52 = vpop.f32.mrf.mxu1  ;;  %v468_v54 = vadd.f32 %v467_v51, %v198_v50 }
  0xc0   :  { %v482_v57 = vadd.f32 %v481_v52, %v468_v54 }
  0xc5   :  { %v495_v56 = vpop.f32.mrf.mxu2  ;;  %v469_v58 = vpop.f32.mrf.mxu0 }
  0xc6   :  { %v483_v59 = vpop.f32.mrf.mxu1  ;;  %v470_v61 = vadd.f32 %v469_v58, %v198_v50  ;;  %v496_v62 = vadd.f32 %v495_v56, %v482_v57  ;;  %v1333_v50 = vld [vmem:[%s1622_s6] ss:$0 sm:$0xff] }
  0xc8   :  { %v484_v63 = vadd.f32 %v483_v59, %v470_v61  ;;  %v542_v1 = vmax.f32 %v496_v62, 0.0 }
  0xca   :  { %v509_v5 = vpop.f32.mrf.mxu3 }
  0xcb   :  { %v510_v9 = vadd.f32 %v509_v5, %v199_v6 }
  0xcd   :  { %v497_v0 = vpop.f32.mrf.mxu2 }
  0xce   :  { %v498_v2 = vadd.f32 %v497_v0, %v484_v63 }
  0xd0   :  { %v544_v3 = vmax.f32 %v498_v2, 0.0 }
  0xd2   :  { %v546_v4 = vpack.c.bf16 %v544_v3, %v542_v1  ;;  %v511_v10 = vpop.f32.mrf.mxu3 }
  0xd3   :  { %v512_v12 = vadd.f32 %v511_v10, %v199_v6 }
  0xd4   :  { %687 = vmatmul.bf16.vlgmr.msrb.gmra.mxu2 %v546_v4 }
  0xdd   :  { %v523_v7 = vpop.f32.mrf.mxu0 }
  0xde   :  { %v537_v8 = vpop.f32.mrf.mxu1  ;;  %v524_v11 = vadd.f32 %v523_v7, %v510_v9 }
  0xe0   :  { %v538_v14 = vadd.f32 %v537_v8, %v524_v11 }
  0xe2   :  { %v543_v18 = vmax.f32 %v538_v14, 0.0 }
  0xe5   :  { %v525_v13 = vpop.f32.mrf.mxu0 }
  0xe6   :  { %v526_v15 = vadd.f32 %v525_v13, %v512_v12  ;;  %v539_v16 = vpop.f32.mrf.mxu1 }
  0xe8   :  { %v540_v17 = vadd.f32 %v539_v16, %v526_v15 }
  0xea   :  { %v545_v19 = vmax.f32 %v540_v17, 0.0 }
  0xec   :  { %v547_v20 = vpack.c.bf16 %v545_v19, %v543_v18 }
  0xee   :  { %701 = vmatmul.bf16.vlgmr.msrb.gmra.mxu3 %v547_v20 }
 0x157   :  { %v688_v33 = vpop.f32.mrf.mxu2 }
 0x158   :  { %v689_v37 = vadd.f32 %v1332_v35, %v688_v33 }
 0x15f   :  { %v690_v36 = vpop.f32.mrf.mxu2 }
 0x160   :  { %v691_v38 = vadd.f32 %v1332_v35, %v690_v36 }
 0x171   :  { %v702_v34 = vpop.f32.mrf.mxu3 }
 0x172   :  { %v703_v39 = vadd.f32 %v702_v34, %v689_v37 }
 0x174   :  { %v707_v42 = vmax.f32 %v703_v39, 0.0 }
 0x179   :  { %v704_v40 = vpop.f32.mrf.mxu3 }
 0x17a   :  { %v705_v41 = vadd.f32 %v704_v40, %v691_v38 }
 0x17c   :  { %v708_v43 = vmax.f32 %v705_v41, 0.0 }
 0x17e   :  { %v709_v44 = vpack.c.bf16 %v708_v43, %v707_v42 }
 0x180   :  { %785 = vmatmul.bf16.vlgmr.msra.gmra.mxu0 %v709_v44 }
 0x1fd   :  { %v786_v49 = vpop.f32.mrf.mxu0 }
 0x1fe   :  { %v787_v51 = vadd.f32 %v1333_v50, %v786_v49 }
 0x200   :  { %v791_v54 = vmax.f32 %v787_v51, 0.0 }
 0x205   :  { %v788_v52 = vpop.f32.mrf.mxu0 }
 0x206   :  { %v789_v53 = vadd.f32 %v1333_v50, %v788_v52 }
 0x208   :  { %v792_v55 = vmax.f32 %v789_v53, 0.0 }
 0x20a   :  { %v793_v56 = vpack.c.bf16 %v792_v55, %v791_v54 }
 0x20c   :  { %866 = vmatmul.bf16.vlgmr.msra.gmra.mxu1 %v793_v56 }
 0x289   :  { %v867_v57 = vpop.f32.mrf.mxu1 }
 0x291   :  { %v869_v58 = vpop.f32.mrf.mxu1 }
 0x292   :  { %v1316_v59 = vpack.c.bf16 %v869_v58, %v867_v57 }
 0x294   :  { %1317 = vst [vmem:[#allocation14] sm:$0xff] %v1316_v59  }
 0x295   :  { %888 = dma.vmem_to_hbm [thread:$0]  %s881_s1, 128, %s883_s21, [#allocation5], %s1516_s17, %s1516_s17, %s1517_s18  }
 0x296   :  { %1510 = dma.done.wait [#allocation5], 128  }
 0x297   :  { %1511 = vsyncadd [#allocation5], 4294967168 }
 0x298   :  { %893 = vsyncpa [#allocation4], 1 }
 0x299   :  { %894 = vsyncpa [#allocation7], 1 }
 0x29a   :  { %895 = vsyncpa [#allocation10], 1 }
 0x29b   :  { %896 = vsyncpa [#allocation13], 1 }
 0x29c   :  { %897 = vsyncpa [#allocation5], 1 }

</bundles_post_ra>
